<compile_context>
chip_gen: v6e
topology: v6e:2x2x1
jax: 0.10.0
libtpu: 0.0.40
codegen_flags: <defaults>
</compile_context>

<pallas_src>
import jax
import jax.numpy as jnp
from jax.experimental import pallas as pl
from jax.experimental.pallas import tpu as pltpu

H1 = 128       # fc1 out
H2_PAD = 128   # fc2 out (64) padded to 128 lanes
C_PAD = 128    # classes (10) padded to 128 lanes
TM_MAX = 2048  # batch tile cap (fits v5e/v6e/v7x with a 32 MiB scoped-VMEM limit)


def _round_up(n, m):
    return ((n + m - 1) // m) * m


def _pick_tile(batch):
    # Aim for ~4 grid steps (engages both TensorCores on v7x, keeps the pipeline primed),
    # tile rows a multiple of 16 (native bf16/f32 sublane tiling), capped for VMEM.
    tm = _round_up(pl.cdiv(batch, 4), 16)
    return max(16, min(TM_MAX, tm))


def mlp_kernel(x_ref, w1_ref, b1_ref, w2_ref, b2_ref, w3_ref, b3_ref, o_ref):
    # Cast the f32 input tile to bf16 in-kernel (no wrapper pre-pass / extra HBM roundtrip).
    x = x_ref[...].astype(jnp.bfloat16)
    # fc1 + relu  (bf16 operands, f32 MXU accumulation)
    h1 = jnp.dot(x, w1_ref[...], preferred_element_type=jnp.float32)
    h1 = jnp.maximum(h1 + b1_ref[...], 0.0).astype(jnp.bfloat16)
    # fc2 + relu
    h2 = jnp.dot(h1, w2_ref[...], preferred_element_type=jnp.float32)
    h2 = jnp.maximum(h2 + b2_ref[...], 0.0).astype(jnp.bfloat16)
    # fc3 (padded class lanes carry a -1e30 f32 bias so they vanish in the softmax)
    logits = jnp.dot(h2, w3_ref[...], preferred_element_type=jnp.float32) + b3_ref[...]
    # numerically stable log_softmax over the lane-dense 128-wide class dim (all f32 math)
    m = jnp.max(logits, axis=-1, keepdims=True)
    shifted = logits - m
    lse = jnp.log(jnp.sum(jnp.exp(shifted), axis=-1, keepdims=True))
    o_ref[...] = (shifted - lse).astype(o_ref.dtype)   # bf16 store (halves writeback bytes)


def prepare_params(w1, b1, w2, b2, w3, b3):
    """One-time packing (hoisted out of the forward): pad hidden2/class dims to 128,
    cast weights to bf16, keep biases f32 (the -1e30 class pad must stay f32)."""
    w1p = w1.astype(jnp.bfloat16)                                              # (784, 128)
    b1p = b1.reshape(1, H1).astype(jnp.float32)                                # (1, 128)
    w2p = jnp.pad(w2, ((0, 0), (0, H2_PAD - 64))).astype(jnp.bfloat16)         # (128, 128)
    b2p = jnp.pad(b2.reshape(1, 64), ((0, 0), (0, H2_PAD - 64))).astype(jnp.float32)
    w3p = jnp.pad(w3, ((0, H2_PAD - 64), (0, C_PAD - 10))).astype(jnp.bfloat16)  # (128, 128)
    b3p = jnp.pad(b3.reshape(1, 10), ((0, 0), (0, C_PAD - 10)),
                  constant_values=-1e30).astype(jnp.float32)                   # (1, 128)
    return w1p, b1p, w2p, b2p, w3p, b3p


def mlp_forward(x, w1p, b1p, w2p, b2p, w3p, b3p):
    # mirrors torch's x.view(-1, 784); x stays f32 in HBM and is cast in-kernel
    x2d = x.reshape(-1, 784)
    B = x2d.shape[0]
    tm = _pick_tile(B)
    grid = (pl.cdiv(B, tm),)
    const = lambda i: (0, 0)   # weights/biases: same block every step -> VMEM-resident

    flops = 2 * B * (784 * H1 + H1 * H2_PAD + H2_PAD * C_PAD)
    bytes_accessed = (x2d.size * 4
                      + (w1p.size + w2p.size + w3p.size) * 2
                      + (b1p.size + b2p.size + b3p.size) * 4
                      + B * C_PAD * 2)

    out = pl.pallas_call(
        mlp_kernel,
        out_shape=jax.ShapeDtypeStruct((B, C_PAD), jnp.bfloat16),
        grid_spec=pltpu.PrefetchScalarGridSpec(
            num_scalar_prefetch=0,
            grid=grid,
            in_specs=[
                pl.BlockSpec((tm, 784), lambda i: (i, 0)),   # x tile (784 == full array dim)
                pl.BlockSpec((784, H1), const),              # w1
                pl.BlockSpec((1, H1), const),                # b1
                pl.BlockSpec((H1, H2_PAD), const),           # w2
                pl.BlockSpec((1, H2_PAD), const),            # b2
                pl.BlockSpec((H2_PAD, C_PAD), const),        # w3
                pl.BlockSpec((1, C_PAD), const),             # b3
            ],
            out_specs=pl.BlockSpec((tm, C_PAD), lambda i: (i, 0)),
        ),
        compiler_params=pltpu.CompilerParams(
            dimension_semantics=("parallel",),
            vmem_limit_bytes=32 * 1024 * 1024,
        ),
        cost_estimate=pl.CostEstimate(
            flops=flops,
            transcendentals=B * (C_PAD + 1),
            bytes_accessed=bytes_accessed,
        ),
    )(x2d, w1p, b1p, w2p, b2p, w3p, b3p)

    # drop the 118 padded class lanes; cast the tiny (B, 10) result back to f32
    return out[:, :10].astype(jnp.float32)


def init_params(key):
    # Deterministic init mimicking nn.Linear's U(-1/sqrt(fan_in), 1/sqrt(fan_in)),
    # stored pre-transposed as (in, out) so the kernel computes x @ W + b.
    def linear(key, fan_in, fan_out):
        kw, kb = jax.random.split(key)
        bound = 1.0 / jnp.sqrt(fan_in)
        w = jax.random.uniform(kw, (fan_in, fan_out), jnp.float32, -bound, bound)
        b = jax.random.uniform(kb, (1, fan_out), jnp.float32, -bound, bound)
        return w, b

    k1, k2, k3 = jax.random.split(key, 3)
    w1, b1 = linear(k1, 784, 128)
    w2, b2 = linear(k2, 128, 64)
    w3, b3 = linear(k3, 64, 10)
    return w1, b1, w2, b2, w3, b3


if __name__ == "__main__":
    key = jax.random.PRNGKey(0)
    kp, kx = jax.random.split(key)
    w1, b1, w2, b2, w3, b3 = init_params(kp)

    # One-time parameter packing (hoisted out of the per-call forward path).
    params = prepare_params(w1, b1, w2, b2, w3, b3)

    # Small MNIST-like batch: (64, 1, 28, 28) -> flattened to (64, 784) inside the wrapper.
    # Batch 64 -> tile 16, 4 grid steps (exercises the pipelined / parallel batch grid).
    x = jax.random.normal(kx, (64, 1, 28, 28), jnp.float32)

    fwd = jax.jit(mlp_forward)
    out = jax.block_until_ready(fwd(x, *params))

    # Pure-JAX f32 reference of the same forward pass (kernel uses bf16 weights/activations with
    # f32 accumulation and a bf16 output store, hence the bf16-appropriate tolerance).
    x2d = x.reshape(-1, 784)
    h1 = jnp.maximum(x2d @ w1 + b1, 0.0)
    h2 = jnp.maximum(h1 @ w2 + b2, 0.0)
    logits = h2 @ w3 + b3
    ref = jax.nn.log_softmax(logits, axis=1)

    assert out.shape == (64, 10)
    assert bool(jnp.all(jnp.isfinite(out)))
    assert jnp.allclose(out, ref, atol=5e-2, rtol=5e-2)

    print("KERNEL_OK")
</pallas_src>

<mosaic_0001>
module attributes {stable_mosaic.version = 11 : i64} {
  func.func @mlp_kernel(%arg0: i32, %arg1: memref<16x784xf32, #tpu.memory_space<vmem>>, %arg2: memref<784x128xbf16, #tpu.memory_space<vmem>>, %arg3: memref<1x128xf32, #tpu.memory_space<vmem>>, %arg4: memref<128x128xbf16, #tpu.memory_space<vmem>>, %arg5: memref<1x128xf32, #tpu.memory_space<vmem>>, %arg6: memref<128x128xbf16, #tpu.memory_space<vmem>>, %arg7: memref<1x128xf32, #tpu.memory_space<vmem>>, %arg8: memref<16x128xbf16, #tpu.memory_space<vmem>>) attributes {dimension_semantics = [#tpu.dimension_semantics<parallel>], iteration_bounds = array<i64: 4>, scalar_prefetch = 0 : i64, scratch_operands = 0 : i64, tpu.core_type = #tpu.core_type<tc>, window_params = [{transform_indices = @transform_0, window_bounds = array<i64: 16, 784>}, {pipeline_mode = #tpu.pipeline_mode<synchronous>, transform_indices = @transform_1, window_bounds = array<i64: 784, 128>}, {pipeline_mode = #tpu.pipeline_mode<synchronous>, transform_indices = @transform_2, window_bounds = array<i64: 1, 128>}, {pipeline_mode = #tpu.pipeline_mode<synchronous>, transform_indices = @transform_3, window_bounds = array<i64: 128, 128>}, {pipeline_mode = #tpu.pipeline_mode<synchronous>, transform_indices = @transform_4, window_bounds = array<i64: 1, 128>}, {pipeline_mode = #tpu.pipeline_mode<synchronous>, transform_indices = @transform_5, window_bounds = array<i64: 128, 128>}, {pipeline_mode = #tpu.pipeline_mode<synchronous>, transform_indices = @transform_6, window_bounds = array<i64: 1, 128>}, {transform_indices = @transform_7, window_bounds = array<i64: 16, 128>}]} {
    %c0 = arith.constant 0 : index
    %c0_0 = arith.constant 0 : index
    %0 = vector.load %arg1[%c0, %c0_0] : memref<16x784xf32, #tpu.memory_space<vmem>>, vector<16x784xf32>
    %1 = arith.truncf %0 : vector<16x784xf32> to vector<16x784xbf16>
    %c0_1 = arith.constant 0 : index
    %c0_2 = arith.constant 0 : index
    %2 = vector.load %arg2[%c0_1, %c0_2] : memref<784x128xbf16, #tpu.memory_space<vmem>>, vector<784x128xbf16>
    %cst = arith.constant dense<0.000000e+00> : vector<16x128xf32>
    %3 = tpu.matmul %1, %2, %cst {dimension_numbers = #tpu.dot_dimension_numbers<[1], [0], [0], [1], [0, 0, 1, 1], [], []>} : vector<16x784xbf16>, vector<784x128xbf16>, vector<16x128xf32> -> vector<16x128xf32>
    %c0_3 = arith.constant 0 : index
    %c0_4 = arith.constant 0 : index
    %4 = vector.load %arg3[%c0_3, %c0_4] : memref<1x128xf32, #tpu.memory_space<vmem>>, vector<1x128xf32>
    %5 = vector.broadcast %4 : vector<1x128xf32> to vector<16x128xf32>
    %6 = arith.addf %3, %5 : vector<16x128xf32>
    %cst_5 = arith.constant 0.000000e+00 : f32
    %7 = vector.broadcast %cst_5 : f32 to vector<16x128xf32>
    %8 = arith.maximumf %6, %7 : vector<16x128xf32>
    %9 = arith.truncf %8 : vector<16x128xf32> to vector<16x128xbf16>
    %c0_6 = arith.constant 0 : index
    %c0_7 = arith.constant 0 : index
    %10 = vector.load %arg4[%c0_6, %c0_7] : memref<128x128xbf16, #tpu.memory_space<vmem>>, vector<128x128xbf16>
    %cst_8 = arith.constant dense<0.000000e+00> : vector<16x128xf32>
    %11 = tpu.matmul %9, %10, %cst_8 {dimension_numbers = #tpu.dot_dimension_numbers<[1], [0], [0], [1], [0, 0, 1, 1], [], []>} : vector<16x128xbf16>, vector<128x128xbf16>, vector<16x128xf32> -> vector<16x128xf32>
    %c0_9 = arith.constant 0 : index
    %c0_10 = arith.constant 0 : index
    %12 = vector.load %arg5[%c0_9, %c0_10] : memref<1x128xf32, #tpu.memory_space<vmem>>, vector<1x128xf32>
    %13 = vector.broadcast %12 : vector<1x128xf32> to vector<16x128xf32>
    %14 = arith.addf %11, %13 : vector<16x128xf32>
    %cst_11 = arith.constant 0.000000e+00 : f32
    %15 = vector.broadcast %cst_11 : f32 to vector<16x128xf32>
    %16 = arith.maximumf %14, %15 : vector<16x128xf32>
    %17 = arith.truncf %16 : vector<16x128xf32> to vector<16x128xbf16>
    %c0_12 = arith.constant 0 : index
    %c0_13 = arith.constant 0 : index
    %18 = vector.load %arg6[%c0_12, %c0_13] : memref<128x128xbf16, #tpu.memory_space<vmem>>, vector<128x128xbf16>
    %cst_14 = arith.constant dense<0.000000e+00> : vector<16x128xf32>
    %19 = tpu.matmul %17, %18, %cst_14 {dimension_numbers = #tpu.dot_dimension_numbers<[1], [0], [0], [1], [0, 0, 1, 1], [], []>} : vector<16x128xbf16>, vector<128x128xbf16>, vector<16x128xf32> -> vector<16x128xf32>
    %c0_15 = arith.constant 0 : index
    %c0_16 = arith.constant 0 : index
    %20 = vector.load %arg7[%c0_15, %c0_16] : memref<1x128xf32, #tpu.memory_space<vmem>>, vector<1x128xf32>
    %21 = vector.broadcast %20 : vector<1x128xf32> to vector<16x128xf32>
    %22 = arith.addf %19, %21 : vector<16x128xf32>
    %cst_17 = arith.constant dense<0xFF800000> : vector<16xf32>
    %23 = vector.multi_reduction <maximumf>, %22, %cst_17 [1] : vector<16x128xf32> to vector<16xf32>
    %24 = vector.shape_cast %23 : vector<16xf32> to vector<16x1xf32>
    %25 = vector.broadcast %24 : vector<16x1xf32> to vector<16x128xf32>
    %26 = arith.subf %22, %25 : vector<16x128xf32>
    %27 = math.exp %26 : vector<16x128xf32>
    %cst_18 = arith.constant dense<0.000000e+00> : vector<16xf32>
    %28 = vector.multi_reduction <add>, %27, %cst_18 [1] : vector<16x128xf32> to vector<16xf32>
    %29 = vector.shape_cast %28 : vector<16xf32> to vector<16x1xf32>
    %30 = math.log %29 : vector<16x1xf32>
    %31 = vector.broadcast %30 : vector<16x1xf32> to vector<16x128xf32>
    %32 = arith.subf %26, %31 : vector<16x128xf32>
    %33 = arith.truncf %32 : vector<16x128xf32> to vector<16x128xbf16>
    %c0_19 = arith.constant 0 : index
    %c0_20 = arith.constant 0 : index
    %34 = vector.load %arg8[%c0_19, %c0_20] : memref<16x128xbf16, #tpu.memory_space<vmem>>, vector<16x128xbf16>
    tpu.vector_store %arg8[%c0_19, %c0_20], %33 {strides = array<i32>} : memref<16x128xbf16, #tpu.memory_space<vmem>>, vector<16x128xbf16>,
    return
  }
  func.func @transform_0(%arg0: i32) -> (i32, i32) {
    %c0_i32 = arith.constant 0 : i32
    %c0_i32_0 = arith.constant 0 : i32
    return %arg0, %c0_i32 : i32, i32
  }
  func.func @transform_1(%arg0: i32) -> (i32, i32) {
    %c0_i32 = arith.constant 0 : i32
    %c0_i32_0 = arith.constant 0 : i32
    %c0_i32_1 = arith.constant 0 : i32
    return %c0_i32, %c0_i32_0 : i32, i32
  }
  func.func @transform_2(%arg0: i32) -> (i32, i32) {
    %c0_i32 = arith.constant 0 : i32
    %c0_i32_0 = arith.constant 0 : i32
    %c0_i32_1 = arith.constant 0 : i32
    return %c0_i32, %c0_i32_0 : i32, i32
  }
  func.func @transform_3(%arg0: i32) -> (i32, i32) {
    %c0_i32 = arith.constant 0 : i32
    %c0_i32_0 = arith.constant 0 : i32
    %c0_i32_1 = arith.constant 0 : i32
    return %c0_i32, %c0_i32_0 : i32, i32
  }
  func.func @transform_4(%arg0: i32) -> (i32, i32) {
    %c0_i32 = arith.constant 0 : i32
    %c0_i32_0 = arith.constant 0 : i32
    %c0_i32_1 = arith.constant 0 : i32
    return %c0_i32, %c0_i32_0 : i32, i32
  }
  func.func @transform_5(%arg0: i32) -> (i32, i32) {
    %c0_i32 = arith.constant 0 : i32
    %c0_i32_0 = arith.constant 0 : i32
    %c0_i32_1 = arith.constant 0 : i32
    return %c0_i32, %c0_i32_0 : i32, i32
  }
  func.func @transform_6(%arg0: i32) -> (i32, i32) {
    %c0_i32 = arith.constant 0 : i32
    %c0_i32_0 = arith.constant 0 : i32
    %c0_i32_1 = arith.constant 0 : i32
    return %c0_i32, %c0_i32_0 : i32, i32
  }
  func.func @transform_7(%arg0: i32) -> (i32, i32) {
    %c0_i32 = arith.constant 0 : i32
    %c0_i32_0 = arith.constant 0 : i32
    return %arg0, %c0_i32 : i32, i32
  }
}

</mosaic_0001>

<bundles_post_ra>
// kernel: mlp_forward.1
= control target key start
LH: loop header
LB: loop body
LE: loop exit
PB: predicated region body
PF: predicated region fallthrough
CT: control target
= control target key end

     0   :  { %s1545_s24 = smov 0   ;;  %s1811_s0 = inlined_call_operand.vmem [shape: f32[64,784], index: 0, kind: input, shape index: {}]   ;;  %s1812_s1 = inlined_call_operand.vmem [shape: bf16[784,128], index: 1, kind: input, shape index: {}]   ;;  %s1813_s2 = inlined_call_operand.vmem [shape: f32[1,128], index: 2, kind: input, shape index: {}]   ;;  %s1814_s3 = inlined_call_operand.vmem [shape: bf16[128,128], index: 3, kind: input, shape index: {}]   ;;  %s1815_s4 = inlined_call_operand.vmem [shape: f32[1,128], index: 4, kind: input, shape index: {}]   ;;  %s1816_s5 = inlined_call_operand.vmem [shape: bf16[128,128], index: 5, kind: input, shape index: {}]   ;;  %s1817_s6 = inlined_call_operand.vmem [shape: f32[1,128], index: 6, kind: input, shape index: {}]   ;;  %s1818_s7 = inlined_call_operand.vmem [shape: bf16[64,128], index: 7, kind: output, shape index: {}]  }
   0x1 LB: > { %s1190_s25 = sadd.s32 4294967295, %s1501_s24   ;;  %p1194_p0 = scmp.ge.s32.totalorder %s1501_s24, 1  ;;  %s1501_s24 = sphi %s1545_s24, %s17_s24  }
   0x2   : > { %p239_p1 = scmp.lt.s32.totalorder %s1501_s24, 5 }
   0x4   : > { %p240_p2 = pnand %p1194_p0, %p239_p1 }
   0x5   : > { %s1195_s10 = sshll.u32 (!%p240_p2), %s1190_s25, 1 }
   0x6   : > { %243 = sbr.rel (%p240_p2) target bundleno = 1002 (0x3ea), region = 48  ;;  %p273_p3 = scmp.lt.s32.totalorder (!%p240_p2), %s1195_s10, 7 }
   0xb   : > { %v1422_v0 = vld [vmem:[%s1812_s1 + $0x78] sm:$0xff]   ;;  %v1426_v4 = vld [vmem:[%s1812_s1 + $0x70] sm:$0xff]   ;;  %v1430_v8 = vld [vmem:[%s1812_s1 + $0x68] sm:$0xff]   ;;  %s1820_s10 = smov (!%p273_p3, %s1195_s10), 7  ;;  %v1503_v43 = vmov 0.0   ;;  %vm1504_vm0 = vmmov 0  }
   0xc   : > { %v1423_v1 = vld [vmem:[%s1812_s1 + $0x38] sm:$0xff]   ;;  %1279 = vmatprep.subr.bf16.mxu0 %v1422_v0  ;;  %v1427_v5 = vld [vmem:[%s1812_s1 + $0x30] sm:$0xff]   ;;  %v1431_v9 = vld [vmem:[%s1812_s1 + $0x28] sm:$0xff]   ;;  %s1411_s12 = smul.u32 56, %s1820_s10  ;;  %vm706_vm1 = vcmask 130048   ;;  %s1198_s25 = sshll.u32 %s1820_s10, 2 }
   0xd   : > { %v1424_v2 = vld [vmem:[%s1812_s1 + $0xf8] sm:$0xff]   ;;  %1280 = vmatpush3.bf16.msra.mxu0 %v1423_v1  ;;  %v1428_v6 = vld [vmem:[%s1812_s1 + $0xf0] sm:$0xff]   ;;  %v1432_v10 = vld [vmem:[%s1812_s1 + $0xe8] sm:$0xff]   ;;  %s283_s21 = scalar_lea.vmem %s1818_s7, %s1198_s25 }
   0xe   : > { %v1425_v3 = vld [vmem:[%s1812_s1 + $0xb8] sm:$0xff]   ;;  %1301 = vmatprep.subr.bf16.mxu1 %v1424_v2  ;;  %1281 = vmatprep.subr.bf16.mxu0 %v1426_v4  ;;  %v1429_v7 = vld [vmem:[%s1812_s1 + $0xb0] sm:$0xff]   ;;  %v1433_v11 = vld [vmem:[%s1812_s1 + $0xa8] sm:$0xff]   ;;  %s1648_s22 = scalar_lea.vmem %s1811_s0, %s1411_s12 }
   0xf   : > { %1302 = vmatpush3.bf16.msra.mxu1 %v1425_v3  ;;  %v1434_v12 = vld [vmem:[%s1812_s1 + $0x60] sm:$0xff]   ;;  %v1438_v16 = vld [vmem:[%s1812_s1 + $0x58] sm:$0xff]   ;;  %v1442_v20 = vld [vmem:[%s1812_s1 + $0x50] sm:$0xff]  }
  0x10   : > { %1303 = vmatprep.subr.bf16.mxu1 %v1428_v6  ;;  %v1435_v13 = vld [vmem:[%s1812_s1 + $0x20] sm:$0xff]   ;;  %v1439_v17 = vld [vmem:[%s1812_s1 + $0x18] sm:$0xff]   ;;  %v1443_v21 = vld [vmem:[%s1812_s1 + $0x10] sm:$0xff]  }
  0x11   : > { %1282 = vmatpush3.bf16.msra.mxu0 %v1427_v5  ;;  %v1436_v14 = vld [vmem:[%s1812_s1 + $0xe0] sm:$0xff]   ;;  %v1440_v18 = vld [vmem:[%s1812_s1 + $0xd8] sm:$0xff]   ;;  %v1444_v22 = vld [vmem:[%s1812_s1 + $0xd0] sm:$0xff]  }
  0x12   : > { %1283 = vmatprep.subr.bf16.mxu0 %v1430_v8  ;;  %v1437_v15 = vld [vmem:[%s1812_s1 + $0xa0] sm:$0xff]   ;;  %v1441_v19 = vld [vmem:[%s1812_s1 + $0x98] sm:$0xff]   ;;  %v1445_v23 = vld [vmem:[%s1812_s1 + $0x90] sm:$0xff]  }
  0x13   : > { %1304 = vmatpush3.bf16.msra.mxu1 %v1429_v7  ;;  %v1446_v24 = vld [vmem:[%s1812_s1 + $0x48] sm:$0xff]   ;;  %v1450_v28 = vld [vmem:[%s1812_s1 + $0x40] sm:$0xff]   ;;  %v293_v36 = vld [vmem:[%s1648_s22 + $0x38] sm:$0xff] }
  0x14   : > { %1305 = vmatprep.subr.bf16.mxu1 %v1432_v10  ;;  %v1447_v25 = vld [vmem:[%s1812_s1 + $0x8] sm:$0xff]   ;;  %v1451_v29 = vld [vmem:[%s1812_s1] sm:$0xff]   ;;  %v1454_v38 = vld [vmem:[%s1812_s1 + $0x178] sm:$0xff]  }
  0x15   : > { %1284 = vmatpush3.bf16.msra.mxu0 %v1431_v9  ;;  %v1448_v26 = vld [vmem:[%s1812_s1 + $0xc8] sm:$0xff]   ;;  %v1452_v30 = vld [vmem:[%s1812_s1 + $0xc0] sm:$0xff]   ;;  %v289_v39 = vld [vmem:[%s1648_s22 + $0x18] sm:$0xff] }
  0x16   : > { %1285 = vmatprep.subr.bf16.mxu0 %v1434_v12  ;;  %v1449_v27 = vld [vmem:[%s1812_s1 + $0x88] sm:$0xff]   ;;  %v294_v32 = vld [vmem:[%s1648_s22 + $0x40] sm:$0xff]  ;;  %v296_v40 = vld [vmem:[%s1648_s22 + $0x50] sm:$0xff] }
  0x17   : > { %1306 = vmatpush3.bf16.msra.mxu1 %v1433_v11  ;;  %v287_v31 = vld [vmem:[%s1648_s22 + $0x8] sm:$0xff]  ;;  %v1453_v34 = vld [vmem:[%s1812_s1 + $0x80] sm:$0xff]   ;;  %v303_v41 = vpack.c.bf16 %v296_v40, %v289_v39  ;;  %v1455_v42 = vld [vmem:[%s1812_s1 + $0x138] sm:$0xff]  }
  0x18   : > { %1307 = vmatprep.subr.bf16.mxu1 %v1436_v14  ;;  %v301_v33 = vpack.c.bf16 %v294_v32, %v287_v31  ;;  %v286_v35 = vld [vmem:[%s1648_s22] sm:$0xff]  ;;  %v288_v44 = vld [vmem:[%s1648_s22 + $0x10] sm:$0xff]  ;;  %v295_v45 = vld [vmem:[%s1648_s22 + $0x48] sm:$0xff] }
  0x19   : > { %1286 = vmatpush3.bf16.msra.mxu0 %v1435_v13  ;;  %v300_v37 = vpack.c.bf16 %v293_v36, %v286_v35  ;;  %783 = vmatprep.mubr.bf16.mxu1 %v303_v41  ;;  %v302_v46 = vpack.c.bf16 %v295_v45, %v288_v44  ;;  %v1456_v47 = vld [vmem:[%s1812_s1 + $0x170] sm:$0xff]   ;;  %v1458_v49 = vld [vmem:[%s1812_s1 + $0x168] sm:$0xff]   ;;  %v1460_v51 = vld [vmem:[%s1812_s1 + $0x160] sm:$0xff]  }
  0x1a   : > { %1287 = vmatprep.subr.bf16.mxu0 %v1438_v16  ;;  %742 = vmatprep.mubr.bf16.mxu0 %v301_v33  ;;  %v1457_v48 = vld [vmem:[%s1812_s1 + $0x130] sm:$0xff]   ;;  %v1459_v50 = vld [vmem:[%s1812_s1 + $0x128] sm:$0xff]   ;;  %v1461_v52 = vld [vmem:[%s1812_s1 + $0x120] sm:$0xff]  }
  0x1b   : > { %1308 = vmatpush3.bf16.msra.mxu1 %v1437_v15  ;;  %v1462_v53 = vld [vmem:[%s1812_s1 + $0x158] sm:$0xff]   ;;  %v1464_v55 = vld [vmem:[%s1812_s1 + $0x150] sm:$0xff]   ;;  %v1470_v56 = vld [vmem:[%s1812_s1 + $0x180] sm:$0xff]  }
  0x1c   : > { %1309 = vmatprep.subr.bf16.mxu1 %v1440_v18  ;;  %v1463_v54 = vld [vmem:[%s1812_s1 + $0x118] sm:$0xff]   ;;  %v291_v57 = vld [vmem:[%s1648_s22 + $0x28] sm:$0xff]  ;;  %v1465_v58 = vld [vmem:[%s1812_s1 + $0x110] sm:$0xff]  }
  0x1d   : > { %1288 = vmatpush3.bf16.msra.mxu0 %v1439_v17  ;;  %v1466_v59 = vld [vmem:[%s1812_s1 + $0x148] sm:$0xff]   ;;  %v298_v60 = vld [vmem:[%s1648_s22 + $0x60] sm:$0xff]  ;;  %v292_v62 = vld [vmem:[%s1648_s22 + $0x30] sm:$0xff] }
  0x1e   : > { %1289 = vmatprep.subr.bf16.mxu0 %v1442_v20  ;;  %v305_v61 = vpack.c.bf16 %v298_v60, %v291_v57  ;;  %v299_v63 = vld [vmem:[%s1648_s22 + $0x68] sm:$0xff]  ;;  %v1468_v2 = vld [vmem:[%s1812_s1 + $0x140] sm:$0xff]   ;;  %v297_v5 = vld [vmem:[%s1648_s22 + $0x58] sm:$0xff] }
  0x1f   : > { %1310 = vmatpush3.bf16.msra.mxu1 %v1441_v19  ;;  %v306_v0 = vpack.c.bf16 %v299_v63, %v292_v62  ;;  %v1467_v1 = vld [vmem:[%s1812_s1 + $0x108] sm:$0xff]   ;;  %v1469_v3 = vld [vmem:[%s1812_s1 + $0x100] sm:$0xff]   ;;  %v1471_v7 = vld [vmem:[%s1814_s3 + $0x38] sm:$0xff]  }
  0x20   : > { %1311 = vmatprep.subr.bf16.mxu1 %v1444_v22  ;;  %v290_v4 = vld [vmem:[%s1648_s22 + $0x20] sm:$0xff]  ;;  %v1472_v8 = vld [vmem:[%s1814_s3 + $0x30] sm:$0xff]   ;;  %v1473_v9 = vld [vmem:[%s1814_s3 + $0x28] sm:$0xff]  }
  0x21   : > { %1290 = vmatpush3.bf16.msra.mxu0 %v1443_v21  ;;  %v304_v6 = vpack.c.bf16 %v297_v5, %v290_v4  ;;  %v1474_v10 = vld [vmem:[%s1814_s3 + $0x20] sm:$0xff]   ;;  %v1475_v11 = vld [vmem:[%s1814_s3 + $0x18] sm:$0xff]   ;;  %v1476_v12 = vld [vmem:[%s1814_s3 + $0x10] sm:$0xff]  }
  0x22   : > { %1291 = vmatprep.subr.bf16.mxu0 %v1446_v24  ;;  %v1477_v13 = vld [vmem:[%s1814_s3 + $0x8] sm:$0xff]   ;;  %v1478_v14 = vld [vmem:[%s1814_s3] sm:$0xff]   ;;  %v1479_v15 = vld [vmem:[%s1816_s5 + $0x38] sm:$0xff]  }
  0x23   : > { %1312 = vmatpush3.bf16.msra.mxu1 %v1445_v23  ;;  %v1480_v16 = vld [vmem:[%s1816_s5 + $0x30] sm:$0xff]   ;;  %v1481_v17 = vld [vmem:[%s1816_s5 + $0x28] sm:$0xff]   ;;  %v1482_v18 = vld [vmem:[%s1816_s5 + $0x20] sm:$0xff]  }
  0x24   : > { %1313 = vmatprep.subr.bf16.mxu1 %v1448_v26  ;;  %v1483_v19 = vld [vmem:[%s1816_s5 + $0x18] sm:$0xff]   ;;  %v1199_v32 = vld [vmem:[%s1813_s2] ss:$0 sm:$0xff] }
  0x25   : > { %1292 = vmatpush3.bf16.msra.mxu0 %v1447_v25  ;;  %v1486_v57 = vld [vmem:[%s1816_s5] sm:$0xff]  }
  0x26   : > { %1293 = vmatprep.subr.bf16.mxu0 %v1450_v28 }
  0x27   : > { %1314 = vmatpush3.bf16.msra.mxu1 %v1449_v27 }
  0x28   : > { %1315 = vmatprep.subr.bf16.mxu1 %v1452_v30 }
  0x29   : > { %1294 = vmatpush3.bf16.msra.mxu0 %v1451_v29 }
  0x2a   : > { %1323 = vmatprep.subr.bf16.mxu0 %v1454_v38 }
  0x2b   : > { %1316 = vmatpush3.bf16.msra.mxu1 %v1453_v34 }
  0x2c   : > { %1365 = vmatprep.subr.bf16.mxu1 %v1503_v43  ;;  %743 = vmatmul.mubr.bf16.vlgmr.msra.gmra.mxu0 %v300_v37 }
  0x2d   : > { %1324 = vmatpush3.bf16.msra.mxu0 %v1455_v42  ;;  %824 = vmatprep.mubr.bf16.mxu0 %v305_v61 }
  0x2e   : > { %784 = vmatmul.mubr.bf16.vlgmr.msra.gmra.mxu1 %v302_v46  ;;  %1325 = vmatprep.subr.bf16.mxu0 %v1456_v47 }
  0x2f   : > { %1367 = vmatprep.mubr.msk.bf16.mxu1 %vm1504_vm0, %v1503_v43  ;;  %1366 = vmatpush3.bf16.msra.mxu1 %v1470_v56  ;;  %v1485_v56 = vld [vmem:[%s1816_s5 + $0x8] sm:$0xff]  }
  0x30   : > { %1371 = vmatprep.subr.bf16.mxu1 %v1503_v43 }
  0x31   : > { %1326 = vmatpush3.bf16.msra.mxu0 %v1457_v48 }
  0x32   : > { %1327 = vmatprep.subr.bf16.mxu0 %v1458_v49 }
  0x35   : > { %1328 = vmatpush3.bf16.msra.mxu0 %v1459_v50 }
  0x36   : > { %1329 = vmatprep.subr.bf16.mxu0 %v1460_v51  ;;  %1368 = vmatmul.mubr.msk.bf16.vlgmr.msra.gmra.mxu1 %vm706_vm1, %v306_v0 }
  0x37   : > { %1387 = vmatprep.mubr.msk.bf16.mxu1 %vm1504_vm0, %v1503_v43  ;;  %1372 = vmatpush3.bf16.msra.mxu1 %v1471_v7 }
  0x38   : > { %1373 = vmatprep.subr.bf16.mxu1 %v1503_v43 }
  0x39   : > { %1330 = vmatpush3.bf16.msra.mxu0 %v1461_v52 }
  0x3a   : > { %1331 = vmatprep.subr.bf16.mxu0 %v1462_v53 }
  0x3b   : > { %1374 = vmatpush3.bf16.msra.mxu1 %v1472_v8 }
  0x3c   : > { %1375 = vmatprep.subr.bf16.mxu1 %v1503_v43 }
  0x3d   : > { %1332 = vmatpush3.bf16.msra.mxu0 %v1463_v54 }
  0x3e   : > { %1333 = vmatprep.subr.bf16.mxu0 %v1464_v55  ;;  %v1484_v55 = vld [vmem:[%s1816_s5 + $0x10] sm:$0xff]  }
  0x3f   : > { %1376 = vmatpush3.bf16.msra.mxu1 %v1473_v9 }
  0x40   : > { %1377 = vmatprep.subr.bf16.mxu1 %v1503_v43 }
  0x41   : > { %1334 = vmatpush3.bf16.msra.mxu0 %v1465_v58  ;;  %v1250_v58 = vld [vmem:[%s1815_s4] ss:$0 sm:$0xff] }
  0x42   : > { %1335 = vmatprep.subr.bf16.mxu0 %v1466_v59 }
  0x43   : > { %1378 = vmatpush3.bf16.msra.mxu1 %v1474_v10 }
  0x44   : > { %1379 = vmatprep.subr.bf16.mxu1 %v1503_v43 }
  0x45   : > { %1336 = vmatpush3.bf16.msra.mxu0 %v1467_v1 }
  0x46   : > { %1337 = vmatprep.subr.bf16.mxu0 %v1468_v2 }
  0x47   : > { %1380 = vmatpush3.bf16.msra.mxu1 %v1475_v11 }
  0x48   : > { %1381 = vmatprep.subr.bf16.mxu1 %v1503_v43 }
  0x49   : > { %1338 = vmatpush3.bf16.msra.mxu0 %v1469_v3 }
  0x4a   : > { %1391 = vmatprep.subr.bf16.mxu0 %v1503_v43 }
  0x4b   : > { %1382 = vmatpush3.bf16.msra.mxu1 %v1476_v12 }
  0x4c   : > { %825 = vmatmul.mubr.bf16.vlgmr.msra.gmra.mxu0 %v304_v6  ;;  %1383 = vmatprep.subr.bf16.mxu1 %v1503_v43 }
  0x4d   : > { %1407 = vmatprep.mubr.msk.bf16.mxu0 %vm1504_vm0, %v1503_v43  ;;  %1392 = vmatpush3.bf16.msra.mxu0 %v1479_v15 }
  0x4e   : > { %1393 = vmatprep.subr.bf16.mxu0 %v1503_v43 }
  0x4f   : > { %1384 = vmatpush3.bf16.msra.mxu1 %v1477_v13 }
  0x50   : > { %1385 = vmatprep.subr.bf16.mxu1 %v1503_v43 }
  0x51   : > { %1394 = vmatpush3.bf16.msra.mxu0 %v1480_v16 }
  0x52   : > { %1395 = vmatprep.subr.bf16.mxu0 %v1503_v43 }
  0x53   : > { %1386 = vmatpush3.bf16.msra.mxu1 %v1478_v14 }
  0x55   : > { %1396 = vmatpush3.bf16.msra.mxu0 %v1481_v17 }
  0x56   : > { %1397 = vmatprep.subr.bf16.mxu0 %v1503_v43 }
  0x59   : > { %1398 = vmatpush3.bf16.msra.mxu0 %v1482_v18 }
  0x5a   : > { %1399 = vmatprep.subr.bf16.mxu0 %v1503_v43 }
  0x5d   : > { %1400 = vmatpush3.bf16.msra.mxu0 %v1483_v19 }
  0x5e   : > { %1401 = vmatprep.subr.bf16.mxu0 %v1503_v43 }
  0x61   : > { %1402 = vmatpush3.bf16.msra.mxu0 %v1484_v55 }
  0x62   : > { %1403 = vmatprep.subr.bf16.mxu0 %v1503_v43 }
  0x65   : > { %1404 = vmatpush3.bf16.msra.mxu0 %v1485_v56 }
  0x66   : > { %1405 = vmatprep.subr.bf16.mxu0 %v1503_v43  ;;  %v1259_v43 = vld [vmem:[%s1817_s6] ss:$0 sm:$0xff] }
  0x69   : > { %1406 = vmatpush3.bf16.msra.mxu0 %v1486_v57 }
  0xec   : > { %v1295_v23 = vpop.f32.mrf.mxu0 }
  0xee   : > { %v1317_v20 = vpop.f32.mrf.mxu1  ;;  %v1296_v25 = vpop.f32.mrf.mxu0 }
  0xef   : > { %v1297_v31 = vadd.f32 %v1296_v25, %v1295_v23 }
  0xf0   : > { %v1318_v21 = vpop.f32.mrf.mxu1  ;;  %v1298_v28 = vpop.f32.mrf.mxu0 }
  0xf1   : > { %v745_v34 = vadd.f32 %v1297_v31, %v1199_v32  ;;  %v1319_v35 = vadd.f32 %v1318_v21, %v1317_v20 }
  0xf2   : > { %v1320_v22 = vpop.f32.mrf.mxu1  ;;  %v1299_v33 = vpop.f32.mrf.mxu0 }
  0xf3   : > { %v1300_v36 = vadd.f32 %v1299_v33, %v1298_v28  ;;  %v786_v39 = vadd.f32 %v1319_v35, %v745_v34 }
  0xf4   : > { %v1321_v24 = vpop.f32.mrf.mxu1 }
  0xf5   : > { %v748_v40 = vadd.f32 %v1300_v36, %v1199_v32  ;;  %v1322_v41 = vadd.f32 %v1321_v24, %v1320_v22 }
  0xf6   : > { %v867_v26 = vpop.f32.mrf.mxu1 }
  0xf7   : > { %v789_v47 = vadd.f32 %v1322_v41, %v748_v40 }
  0xf8   : > { %v1369_v27 = vpop.f32.mrf.mxu1 }
  0xfa   : > { %v870_v29 = vpop.f32.mrf.mxu1 }
  0xfc   : > { %v1370_v30 = vpop.f32.mrf.mxu1 }
 0x10c   : > { %v1339_v37 = vpop.f32.mrf.mxu0 }
 0x10e   : > { %v1340_v38 = vpop.f32.mrf.mxu0 }
 0x10f   : > { %v1341_v42 = vadd.f32 %v1340_v38, %v1339_v37 }
 0x110   : > { %v1342_v44 = vpop.f32.mrf.mxu0 }
 0x111   : > { %v827_v45 = vadd.f32 %v1341_v42, %v786_v39 }
 0x112   : > { %v1343_v46 = vpop.f32.mrf.mxu0 }
 0x113   : > { %v1344_v48 = vadd.f32 %v1343_v46, %v1342_v44  ;;  %v868_v49 = vadd.f32 %v867_v26, %v827_v45 }
 0x115   : > { %v830_v50 = vadd.f32 %v1344_v48, %v789_v47  ;;  %v874_v52 = vmax.f32 %v868_v49, 0.0 }
 0x117   : > { %v871_v51 = vadd.f32 %v870_v29, %v830_v50 }
 0x119   : > { %v875_v53 = vmax.f32 %v871_v51, 0.0 }
 0x11b   : > { %v876_v54 = vpack.c.bf16 %v875_v53, %v874_v52 }
 0x11d   : > { %1388 = vmatmul.mubr.bf16.vlgmr.msra.gmra.mxu1 %v876_v54 }
 0x1dd   : > { %v982_v59 = vpop.f32.mrf.mxu1 }
 0x1de   : > { %v983_v61 = vadd.f32 %v1250_v58, %v982_v59 }
 0x1df   : > { %v1389_v60 = vpop.f32.mrf.mxu1 }
 0x1e0   : > { %v989_v1 = vmax.f32 %v983_v61, 0.0 }
 0x1e1   : > { %v985_v62 = vpop.f32.mrf.mxu1 }
 0x1e2   : > { %v986_v63 = vadd.f32 %v1250_v58, %v985_v62 }
 0x1e3   : > { %v1390_v0 = vpop.f32.mrf.mxu1 }
 0x1e4   : > { %v990_v2 = vmax.f32 %v986_v63, 0.0 }
 0x1e6   : > { %v991_v3 = vpack.c.bf16 %v990_v2, %v989_v1 }
 0x1e8   : > { %1408 = vmatmul.mubr.bf16.vlgmr.msra.gmra.mxu0 %v991_v3 }
 0x2a8   : > { %v1097_v4 = vpop.f32.mrf.mxu0 }
 0x2a9   : > { %v1098_v5 = vadd.f32 %v1259_v43, %v1097_v4 }
 0x2aa   : > { %v1409_v6 = vpop.f32.mrf.mxu0 }
 0x2ab   : > { %1104 = vmax.xlane.f32.xlu0 %v1098_v5 }
 0x2ac   : > { %v1100_v7 = vpop.f32.mrf.mxu0 }
 0x2ad   : > { %v1101_v8 = vadd.f32 %v1259_v43, %v1100_v7 }
 0x2ae   : > { %v1410_v9 = vpop.f32.mrf.mxu0 }
 0x2af   : > { %1106 = vmax.xlane.f32.xlu0 %v1101_v8 }
 0x334   : > { %v1105_v10 = vpop.xlane.xlu0 %1104 }
 0x335   : > { %v1108_v11 = vsub.f32 %v1098_v5, %v1105_v10 }
 0x337   : > { %v1110_v12 = vmul.f32 1.442695, %v1108_v11 }
 0x338   : > { %v1107_v13 = vpop.xlane.xlu0 %1106 }
 0x339   : > { %v1109_v14 = vsub.f32 %v1101_v8, %v1107_v13  ;;  %1487 = vpow2.f32 %v1110_v12 }
 0x33b   : > { %v1112_v15 = vmul.f32 1.442695, %v1109_v14 }
 0x33d   : > { %1489 = vpow2.f32 %v1112_v15 }
 0x346   : > { %v1488_v16 = vpop.eup %1487 }
 0x347   : > { %1114 = vadd.xlane.f32.xlu1 %v1488_v16 }
 0x34a   : > { %v1490_v17 = vpop.eup %1489 }
 0x34b   : > { %1116 = vadd.xlane.f32.xlu1 %v1490_v17 }
 0x3d0   : > { %v1115_v18 = vpop.xlane.xlu1 %1114 }
 0x3d1   : > { %1491 = vlog2.f32 %v1115_v18 }
 0x3d4   : > { %v1117_v19 = vpop.xlane.xlu1 %1116 }
 0x3d5   : > { %1493 = vlog2.f32 %v1117_v19 }
 0x3de   : > { %v1492_v20 = vpop.eup %1491 }
 0x3df   : > { %v1119_v21 = vmul.f32 0.6931472, %v1492_v20 }
 0x3e1   : > { %v1122_v24 = vsub.f32 %v1108_v11, %v1119_v21 }
 0x3e2   : > { %v1494_v22 = vpop.eup %1493 }
 0x3e3   : > { %v1121_v23 = vmul.f32 0.6931472, %v1494_v22 }
 0x3e5   : > { %v1123_v25 = vsub.f32 %v1109_v14, %v1121_v23 }
 0x3e7   : > { %v1277_v26 = vpack.c.bf16 %v1123_v25, %v1122_v24 }
 0x3e9   : > { %1278 = vst [vmem:[%s283_s21] sm:$0xff] %v1277_v26  }
 0x3ea PF: > { %s17_s24 = sadd.s32 1, %s1501_s24  }
 0x3eb   : > { %p14_p4 = scmp.ge.s32.totalorder %s17_s24, 6  }
 0x3ed   :  { %16 = sbr.rel (!%p14_p4) target bundleno = 1 (0x1), region = 78 }

</bundles_post_ra>
